<compile_context>
chip_gen: v6e
topology: v6e:2x2x1
jax: 0.10.0
libtpu: 0.0.40
codegen_flags: <defaults>
</compile_context>

<pallas_src>
import functools

import jax
import jax.numpy as jnp
from jax.experimental import pallas as pl
from jax.experimental.pallas import tpu as pltpu


def _round_up(x, m):
    return ((x + m - 1) // m) * m


def mlp_kernel(x_ref,
               w1_ref, b1_ref,
               w2_ref, b2_ref,
               w3_ref, b3_ref,
               w4_ref, b4_ref,
               o_ref):
    # Four fused (matmul -> bias -> ReLU) layers on one batch tile.
    # MXU operands are bf16; accumulation, bias-add and ReLU run in f32;
    # hidden activations are cast back to bf16 to halve vreg traffic.
    x = x_ref[...].astype(jnp.bfloat16)

    h = jnp.dot(x, w1_ref[...], preferred_element_type=jnp.float32) + b1_ref[...]
    h = jnp.maximum(h, 0.0).astype(jnp.bfloat16)

    h = jnp.dot(h, w2_ref[...], preferred_element_type=jnp.float32) + b2_ref[...]
    h = jnp.maximum(h, 0.0).astype(jnp.bfloat16)

    h = jnp.dot(h, w3_ref[...], preferred_element_type=jnp.float32) + b3_ref[...]
    h = jnp.maximum(h, 0.0).astype(jnp.bfloat16)

    out = jnp.dot(h, w4_ref[...], preferred_element_type=jnp.float32) + b4_ref[...]
    o_ref[...] = out.astype(o_ref.dtype)


@functools.partial(jax.jit, static_argnames=("block_b",))
def mlp_forward(x, params, block_b=None):
    """x: [B, n_feature] float32; params: dict of f32 weights/biases."""
    B, n_feature = x.shape
    n_out = params["w4"].shape[1]

    # ---- batch tile selection (shape-static under jit) -------------------
    if block_b is None:
        if B <= 1024:
            block_b = max(8, _round_up(B, 8))   # single grid step
        else:
            block_b = 1024                      # grid >= 2: feeds both v7x TCs
    block_b = max(8, _round_up(int(block_b), 8))

    B_pad = _round_up(B, block_b)

    # ---- prepare operands -------------------------------------------------
    # x stays f32; it is cast to bf16 inside the kernel (no extra HBM pass).
    x_in = x
    if B_pad != B:
        x_in = jnp.pad(x_in, ((0, B_pad - B), (0, 0)))

    w1 = params["w1"].astype(jnp.bfloat16)
    w2 = params["w2"].astype(jnp.bfloat16)
    w3 = params["w3"].astype(jnp.bfloat16)
    w4 = params["w4"].astype(jnp.bfloat16)

    b1 = params["b1"].astype(jnp.float32)
    b2 = params["b2"].astype(jnp.float32)
    b3 = params["b3"].astype(jnp.float32)
    b4 = params["b4"].astype(jnp.float32)

    grid = (B_pad // block_b,)

    # Weights/biases: single full block, constant index_map -> resident in
    # VMEM across all batch tiles (they are tiny: < 64 KiB total in bf16).
    def full_spec(shape):
        return pl.BlockSpec(shape, lambda i: (0,) * len(shape))

    in_specs = [
        pl.BlockSpec((block_b, n_feature), lambda i: (i, 0)),   # x tile
        full_spec(w1.shape), full_spec(b1.shape),
        full_spec(w2.shape), full_spec(b2.shape),
        full_spec(w3.shape), full_spec(b3.shape),
        full_spec(w4.shape), full_spec(b4.shape),
    ]
    out_specs = pl.BlockSpec((block_b, n_out), lambda i: (i, 0))

    out = pl.pallas_call(
        mlp_kernel,
        out_shape=jax.ShapeDtypeStruct((B_pad, n_out), jnp.float32),
        grid_spec=pltpu.PrefetchScalarGridSpec(
            num_scalar_prefetch=0,
            grid=grid,
            in_specs=in_specs,
            out_specs=out_specs,
        ),
        compiler_params=pltpu.CompilerParams(
            dimension_semantics=("parallel",)),
    )(x_in, w1, b1, w2, b2, w3, b3, w4, b4)

    if B_pad != B:
        out = out[:B]
    return out


def init_mlp_params(key, n_feature, n_out):
    """torch.nn.Linear-style init: U(-1/sqrt(fan_in), +1/sqrt(fan_in)).

    Weights stored as [in_dim, out_dim]; biases as [1, out_dim].
    """
    dims = [(n_feature, 256), (256, 64), (64, 16), (16, n_out)]
    params = {}
    for idx, (fan_in, fan_out) in enumerate(dims, start=1):
        key, kw, kb = jax.random.split(key, 3)
        bound = 1.0 / jnp.sqrt(jnp.float32(fan_in))
        params[f"w{idx}"] = jax.random.uniform(
            kw, (fan_in, fan_out), jnp.float32, minval=-bound, maxval=bound)
        params[f"b{idx}"] = jax.random.uniform(
            kb, (1, fan_out), jnp.float32, minval=-bound, maxval=bound)
    return params


def mlp_reference(x, params):
    h = x
    for i in range(1, 4):
        h = jnp.maximum(h @ params[f"w{i}"] + params[f"b{i}"], 0.0)
    return h @ params["w4"] + params["b4"]


if __name__ == "__main__":
    key = jax.random.PRNGKey(0)
    n_feature, n_out = 32, 4

    params = init_mlp_params(key, n_feature, n_out)

    # Small demo batch (single-tile path).
    key, kx = jax.random.split(key)
    x_small = jax.random.normal(kx, (8, n_feature), dtype=jnp.float32)
    out_small = mlp_forward(x_small, params)
    jax.block_until_ready(out_small)
    ref_small = mlp_reference(x_small, params)
    assert out_small.shape == (8, n_out)
    assert jnp.allclose(out_small, ref_small, atol=3e-2, rtol=3e-2), \
        "small-batch mismatch vs reference"

    # Non-multiple batch with an explicit small tile: exercises the padded,
    # multi-step grid path (B=200, block_b=128 -> grid of 2).
    key, kx2 = jax.random.split(key)
    x_tiled = jax.random.normal(kx2, (200, n_feature), dtype=jnp.float32)
    out_tiled = mlp_forward(x_tiled, params, block_b=128)
    jax.block_until_ready(out_tiled)
    ref_tiled = mlp_reference(x_tiled, params)
    assert out_tiled.shape == (200, n_out)
    assert jnp.allclose(out_tiled, ref_tiled, atol=3e-2, rtol=3e-2), \
        "tiled-batch mismatch vs reference"

    print("KERNEL_OK")
</pallas_src>

<mosaic_0001>
module attributes {stable_mosaic.version = 11 : i64} {
  func.func @mlp_kernel(%arg0: i32, %arg1: memref<8x32xf32, #tpu.memory_space<vmem>>, %arg2: memref<32x256xbf16, #tpu.memory_space<vmem>>, %arg3: memref<1x256xf32, #tpu.memory_space<vmem>>, %arg4: memref<256x64xbf16, #tpu.memory_space<vmem>>, %arg5: memref<1x64xf32, #tpu.memory_space<vmem>>, %arg6: memref<64x16xbf16, #tpu.memory_space<vmem>>, %arg7: memref<1x16xf32, #tpu.memory_space<vmem>>, %arg8: memref<16x4xbf16, #tpu.memory_space<vmem>>, %arg9: memref<1x4xf32, #tpu.memory_space<vmem>>, %arg10: memref<8x4xf32, #tpu.memory_space<vmem>>) attributes {dimension_semantics = [#tpu.dimension_semantics<parallel>], iteration_bounds = array<i64: 1>, scalar_prefetch = 0 : i64, scratch_operands = 0 : i64, tpu.core_type = #tpu.core_type<tc>, window_params = [{transform_indices = @transform_0, window_bounds = array<i64: 8, 32>}, {pipeline_mode = #tpu.pipeline_mode<synchronous>, transform_indices = @transform_1, window_bounds = array<i64: 32, 256>}, {pipeline_mode = #tpu.pipeline_mode<synchronous>, transform_indices = @transform_2, window_bounds = array<i64: 1, 256>}, {pipeline_mode = #tpu.pipeline_mode<synchronous>, transform_indices = @transform_3, window_bounds = array<i64: 256, 64>}, {pipeline_mode = #tpu.pipeline_mode<synchronous>, transform_indices = @transform_4, window_bounds = array<i64: 1, 64>}, {pipeline_mode = #tpu.pipeline_mode<synchronous>, transform_indices = @transform_5, window_bounds = array<i64: 64, 16>}, {pipeline_mode = #tpu.pipeline_mode<synchronous>, transform_indices = @transform_6, window_bounds = array<i64: 1, 16>}, {pipeline_mode = #tpu.pipeline_mode<synchronous>, transform_indices = @transform_7, window_bounds = array<i64: 16, 4>}, {pipeline_mode = #tpu.pipeline_mode<synchronous>, transform_indices = @transform_8, window_bounds = array<i64: 1, 4>}, {transform_indices = @transform_9, window_bounds = array<i64: 8, 4>}]} {
    %c0 = arith.constant 0 : index
    %c0_0 = arith.constant 0 : index
    %0 = vector.load %arg1[%c0, %c0_0] : memref<8x32xf32, #tpu.memory_space<vmem>>, vector<8x32xf32>
    %1 = arith.truncf %0 : vector<8x32xf32> to vector<8x32xbf16>
    %c0_1 = arith.constant 0 : index
    %c0_2 = arith.constant 0 : index
    %2 = vector.load %arg2[%c0_1, %c0_2] : memref<32x256xbf16, #tpu.memory_space<vmem>>, vector<32x256xbf16>
    %cst = arith.constant dense<0.000000e+00> : vector<8x256xf32>
    %3 = tpu.matmul %1, %2, %cst {dimension_numbers = #tpu.dot_dimension_numbers<[1], [0], [0], [1], [0, 0, 1, 1], [], []>} : vector<8x32xbf16>, vector<32x256xbf16>, vector<8x256xf32> -> vector<8x256xf32>
    %c0_3 = arith.constant 0 : index
    %c0_4 = arith.constant 0 : index
    %4 = vector.load %arg3[%c0_3, %c0_4] : memref<1x256xf32, #tpu.memory_space<vmem>>, vector<1x256xf32>
    %5 = vector.broadcast %4 : vector<1x256xf32> to vector<8x256xf32>
    %6 = arith.addf %3, %5 : vector<8x256xf32>
    %cst_5 = arith.constant 0.000000e+00 : f32
    %7 = vector.broadcast %cst_5 : f32 to vector<8x256xf32>
    %8 = arith.maximumf %6, %7 : vector<8x256xf32>
    %9 = arith.truncf %8 : vector<8x256xf32> to vector<8x256xbf16>
    %c0_6 = arith.constant 0 : index
    %c0_7 = arith.constant 0 : index
    %10 = vector.load %arg4[%c0_6, %c0_7] : memref<256x64xbf16, #tpu.memory_space<vmem>>, vector<256x64xbf16>
    %cst_8 = arith.constant dense<0.000000e+00> : vector<8x64xf32>
    %11 = tpu.matmul %9, %10, %cst_8 {dimension_numbers = #tpu.dot_dimension_numbers<[1], [0], [0], [1], [0, 0, 1, 1], [], []>} : vector<8x256xbf16>, vector<256x64xbf16>, vector<8x64xf32> -> vector<8x64xf32>
    %c0_9 = arith.constant 0 : index
    %c0_10 = arith.constant 0 : index
    %12 = vector.load %arg5[%c0_9, %c0_10] : memref<1x64xf32, #tpu.memory_space<vmem>>, vector<1x64xf32>
    %13 = vector.broadcast %12 : vector<1x64xf32> to vector<8x64xf32>
    %14 = arith.addf %11, %13 : vector<8x64xf32>
    %cst_11 = arith.constant 0.000000e+00 : f32
    %15 = vector.broadcast %cst_11 : f32 to vector<8x64xf32>
    %16 = arith.maximumf %14, %15 : vector<8x64xf32>
    %17 = arith.truncf %16 : vector<8x64xf32> to vector<8x64xbf16>
    %c0_12 = arith.constant 0 : index
    %c0_13 = arith.constant 0 : index
    %18 = vector.load %arg6[%c0_12, %c0_13] : memref<64x16xbf16, #tpu.memory_space<vmem>>, vector<64x16xbf16>
    %cst_14 = arith.constant dense<0.000000e+00> : vector<8x16xf32>
    %19 = tpu.matmul %17, %18, %cst_14 {dimension_numbers = #tpu.dot_dimension_numbers<[1], [0], [0], [1], [0, 0, 1, 1], [], []>} : vector<8x64xbf16>, vector<64x16xbf16>, vector<8x16xf32> -> vector<8x16xf32>
    %c0_15 = arith.constant 0 : index
    %c0_16 = arith.constant 0 : index
    %20 = vector.load %arg7[%c0_15, %c0_16] : memref<1x16xf32, #tpu.memory_space<vmem>>, vector<1x16xf32>
    %21 = vector.broadcast %20 : vector<1x16xf32> to vector<8x16xf32>
    %22 = arith.addf %19, %21 : vector<8x16xf32>
    %cst_17 = arith.constant 0.000000e+00 : f32
    %23 = vector.broadcast %cst_17 : f32 to vector<8x16xf32>
    %24 = arith.maximumf %22, %23 : vector<8x16xf32>
    %25 = arith.truncf %24 : vector<8x16xf32> to vector<8x16xbf16>
    %c0_18 = arith.constant 0 : index
    %c0_19 = arith.constant 0 : index
    %26 = vector.load %arg8[%c0_18, %c0_19] : memref<16x4xbf16, #tpu.memory_space<vmem>>, vector<16x4xbf16>
    %cst_20 = arith.constant dense<0.000000e+00> : vector<8x4xf32>
    %27 = tpu.matmul %25, %26, %cst_20 {dimension_numbers = #tpu.dot_dimension_numbers<[1], [0], [0], [1], [0, 0, 1, 1], [], []>} : vector<8x16xbf16>, vector<16x4xbf16>, vector<8x4xf32> -> vector<8x4xf32>
    %c0_21 = arith.constant 0 : index
    %c0_22 = arith.constant 0 : index
    %28 = vector.load %arg9[%c0_21, %c0_22] : memref<1x4xf32, #tpu.memory_space<vmem>>, vector<1x4xf32>
    %29 = vector.broadcast %28 : vector<1x4xf32> to vector<8x4xf32>
    %30 = arith.addf %27, %29 : vector<8x4xf32>
    %c0_23 = arith.constant 0 : index
    %c0_24 = arith.constant 0 : index
    %31 = vector.load %arg10[%c0_23, %c0_24] : memref<8x4xf32, #tpu.memory_space<vmem>>, vector<8x4xf32>
    tpu.vector_store %arg10[%c0_23, %c0_24], %30 {strides = array<i32>} : memref<8x4xf32, #tpu.memory_space<vmem>>, vector<8x4xf32>,
    return
  }
  func.func @transform_0(%arg0: i32) -> (i32, i32) {
    %c0_i32 = arith.constant 0 : i32
    %c0_i32_0 = arith.constant 0 : i32
    return %arg0, %c0_i32 : i32, i32
  }
  func.func @transform_1(%arg0: i32) -> (i32, i32) {
    %c0_i32 = arith.constant 0 : i32
    %c0_i32_0 = arith.constant 0 : i32
    %c0_i32_1 = arith.constant 0 : i32
    return %c0_i32, %c0_i32_0 : i32, i32
  }
  func.func @transform_2(%arg0: i32) -> (i32, i32) {
    %c0_i32 = arith.constant 0 : i32
    %c0_i32_0 = arith.constant 0 : i32
    %c0_i32_1 = arith.constant 0 : i32
    return %c0_i32, %c0_i32_0 : i32, i32
  }
  func.func @transform_3(%arg0: i32) -> (i32, i32) {
    %c0_i32 = arith.constant 0 : i32
    %c0_i32_0 = arith.constant 0 : i32
    %c0_i32_1 = arith.constant 0 : i32
    return %c0_i32, %c0_i32_0 : i32, i32
  }
  func.func @transform_4(%arg0: i32) -> (i32, i32) {
    %c0_i32 = arith.constant 0 : i32
    %c0_i32_0 = arith.constant 0 : i32
    %c0_i32_1 = arith.constant 0 : i32
    return %c0_i32, %c0_i32_0 : i32, i32
  }
  func.func @transform_5(%arg0: i32) -> (i32, i32) {
    %c0_i32 = arith.constant 0 : i32
    %c0_i32_0 = arith.constant 0 : i32
    %c0_i32_1 = arith.constant 0 : i32
    return %c0_i32, %c0_i32_0 : i32, i32
  }
  func.func @transform_6(%arg0: i32) -> (i32, i32) {
    %c0_i32 = arith.constant 0 : i32
    %c0_i32_0 = arith.constant 0 : i32
    %c0_i32_1 = arith.constant 0 : i32
    return %c0_i32, %c0_i32_0 : i32, i32
  }
  func.func @transform_7(%arg0: i32) -> (i32, i32) {
    %c0_i32 = arith.constant 0 : i32
    %c0_i32_0 = arith.constant 0 : i32
    %c0_i32_1 = arith.constant 0 : i32
    return %c0_i32, %c0_i32_0 : i32, i32
  }
  func.func @transform_8(%arg0: i32) -> (i32, i32) {
    %c0_i32 = arith.constant 0 : i32
    %c0_i32_0 = arith.constant 0 : i32
    %c0_i32_1 = arith.constant 0 : i32
    return %c0_i32, %c0_i32_0 : i32, i32
  }
  func.func @transform_9(%arg0: i32) -> (i32, i32) {
    %c0_i32 = arith.constant 0 : i32
    %c0_i32_0 = arith.constant 0 : i32
    return %arg0, %c0_i32 : i32, i32
  }
}

</mosaic_0001>

<bundles_post_ra>
// kernel: mlp_forward.1
= control target key start
LH: loop header
LB: loop body
LE: loop exit
PB: predicated region body
PF: predicated region fallthrough
CT: control target
= control target key end

     0   :  { %v555_v1 = vmov 0   ;;  %vm71_vm0 = vcmask 261120   ;;  %v556_v23 = vmov 0.0   ;;  %v41_v25 = vlaneseq  ;;  %s703_s1 = inlined_call_operand.vmem [shape: bf16[32,256], index: 1, kind: input, shape index: {}]   ;;  %s704_s0 = inlined_call_operand.vmem [shape: f32[8,32], index: 0, kind: input, shape index: {}]   ;;  %s705_s3 = inlined_call_operand.vmem [shape: bf16[256,64], index: 3, kind: input, shape index: {}]   ;;  %s706_s5 = inlined_call_operand.vmem [shape: bf16[64,16], index: 5, kind: input, shape index: {}]   ;;  %s707_s2 = inlined_call_operand.vmem [shape: f32[1,256], index: 2, kind: input, shape index: {}]   ;;  %s708_s7 = inlined_call_operand.vmem [shape: bf16[16,4], index: 7, kind: input, shape index: {}]   ;;  %s709_s4 = inlined_call_operand.vmem [shape: f32[1,64], index: 4, kind: input, shape index: {}]   ;;  %s710_s6 = inlined_call_operand.vmem [shape: f32[1,16], index: 6, kind: input, shape index: {}]   ;;  %s711_s8 = inlined_call_operand.vmem [shape: f32[1,4], index: 8, kind: input, shape index: {}]   ;;  %s712_s9 = inlined_call_operand.vmem [shape: f32[8,4], index: 9, kind: output, shape index: {}]  }
   0x1   :  { %v528_v0 = vld [vmem:[%s703_s1 + $0x14] ss:$8 sps:$4 sm:$0xff]   ;;  %107 = vmatprep.mubr.bf16.mxu0 %v555_v1  ;;  %v530_v2 = vld [vmem:[%s703_s1 + $0x10] ss:$8 sps:$4 sm:$0xff]   ;;  %v531_v3 = vld [vmem:[%s703_s1 + $0x4] ss:$8 sps:$4 sm:$0xff]  }
   0x2   :  { %87 = vmatprep.subr.bf16.mxu0 %v528_v0  ;;  %v533_v4 = vld [vmem:[%s703_s1] ss:$8 sps:$4 sm:$0xff]   ;;  %v534_v6 = vld [vmem:[%s705_s3 + $0x78] sm:$0xff]   ;;  %v536_v8 = vld [vmem:[%s705_s3 + $0x70] sm:$0xff]   ;;  %v42_v26 = vshrl.u32 %v41_v25, 7  ;;  %vm557_vm1 = vmmov 0  }
   0x3   :  { %v33_v5 = vld [vmem:[%s704_s0] sm:$0xff]  ;;  %88 = vmatpush1.bf16.msra.mxu0 %v530_v2  ;;  %v535_v7 = vld [vmem:[%s705_s3 + $0x38] sm:$0xff]   ;;  %478 = vmatprep.subr.bf16.mxu1 %v534_v6  ;;  %v537_v10 = vld [vmem:[%s705_s3 + $0x30] sm:$0xff]   ;;  %vm336_vm2 = vcmask 523264   ;;  %vm397_vm3 = vcmask 130048   ;;  %vm441_vm4 = vcmask 31744  }
   0x4   :  { %89 = vmatprep.subr.bf16.mxu0 %v531_v3  ;;  %v34_v9 = vpack.c.bf16 %v33_v5, %v33_v5  ;;  %479 = vmatpush3.bf16.msra.mxu1 %v535_v7  ;;  %v538_v11 = vld [vmem:[%s705_s3 + $0x68] sm:$0xff]   ;;  %v540_v13 = vld [vmem:[%s705_s3 + $0x60] sm:$0xff]   ;;  %v542_v15 = vld [vmem:[%s705_s3 + $0x58] sm:$0xff]   ;;  %v43_v27 = vsub.s32 0, %v42_v26  ;;  %v47_v29 = vsub.s32 1, %v42_v26 }
   0x5   :  { %480 = vmatprep.subr.bf16.mxu1 %v536_v8  ;;  %v539_v12 = vld [vmem:[%s705_s3 + $0x28] sm:$0xff]   ;;  %v541_v14 = vld [vmem:[%s705_s3 + $0x20] sm:$0xff]   ;;  %v543_v16 = vld [vmem:[%s705_s3 + $0x18] sm:$0xff]  }
   0x6   :  { %v544_v17 = vld [vmem:[%s705_s3 + $0x50] sm:$0xff]   ;;  %v546_v19 = vld [vmem:[%s705_s3 + $0x48] sm:$0xff]   ;;  %v548_v21 = vld [vmem:[%s705_s3 + $0x40] sm:$0xff]  }
   0x7   :  { %90 = vmatpush1.bf16.msra.mxu0 %v533_v4  ;;  %v545_v18 = vld [vmem:[%s705_s3 + $0x10] sm:$0xff]   ;;  %v547_v20 = vld [vmem:[%s705_s3 + $0x8] sm:$0xff]   ;;  %v549_v22 = vld [vmem:[%s705_s3] sm:$0xff]  }
   0x8   :  { %481 = vmatpush3.bf16.msra.mxu1 %v537_v10  ;;  %507 = vmatprep.subr.bf16.mxu0 %v556_v23  ;;  %v550_v24 = vld [vmem:[%s706_s5 + $0x18] sm:$0xff]   ;;  %v39_v28 = vld [vmem:[%s707_s2] sm:$0x3]  ;;  %v551_v42 = vld [vmem:[%s706_s5 + $0x10] sm:$0xff]  }
   0x9   :  { %482 = vmatprep.subr.bf16.mxu1 %v538_v11  ;;  %v44_v30 = vrot.slane %v39_v28, %v43_v27  ;;  %v48_v31 = vrot.slane %v39_v28, %v47_v29  ;;  %v552_v43 = vld [vmem:[%s706_s5 + $0x8] sm:$0xff]   ;;  %v553_v44 = vld [vmem:[%s706_s5] sm:$0xff]  }
   0xa   :  { %451 = vmatmul.mubr.msk.bf16.vlgmr.msra.gmra.mxu0 %vm71_vm0, %v34_v9  ;;  %v452_v46 = vld [vmem:[%s709_s4] ss:$0 sm:$0xff] }
   0xb   :  { %508 = vmatpush3.bf16.msra.mxu0 %v550_v24  ;;  %515 = vmatprep.mubr.msk.bf16.mxu0 %vm557_vm1, %v556_v23  ;;  %v554_v53 = vld [vmem:[%s708_s7] sm:$0xff]  }
   0xc   :  { %483 = vmatpush3.bf16.msra.mxu1 %v539_v12  ;;  %509 = vmatprep.subr.bf16.mxu0 %v556_v23  ;;  %v469_v55 = vld [vmem:[%s710_s6] ss:$0 sm:$0xff] }
   0xd   :  { %484 = vmatprep.subr.bf16.mxu1 %v540_v13  ;;  %v475_v63 = vld [vmem:[%s711_s8] ss:$0 sm:$0xff] }
   0xf   :  { %510 = vmatpush3.bf16.msra.mxu0 %v551_v42 }
  0x10   :  { %485 = vmatpush3.bf16.msra.mxu1 %v541_v14  ;;  %511 = vmatprep.subr.bf16.mxu0 %v556_v23 }
  0x11   :  { %486 = vmatprep.subr.bf16.mxu1 %v542_v15 }
  0x13   :  { %512 = vmatpush3.bf16.msra.mxu0 %v552_v43 }
  0x14   :  { %487 = vmatpush3.bf16.msra.mxu1 %v543_v16  ;;  %513 = vmatprep.subr.bf16.mxu0 %v556_v23 }
  0x15   :  { %488 = vmatprep.subr.bf16.mxu1 %v544_v17 }
  0x17   :  { %514 = vmatpush3.bf16.msra.mxu0 %v553_v44 }
  0x18   :  { %489 = vmatpush3.bf16.msra.mxu1 %v545_v18  ;;  %519 = vmatprep.subr.bf16.mxu0 %v556_v23 }
  0x19   :  { %490 = vmatprep.subr.bf16.mxu1 %v546_v19 }
  0x1c   :  { %491 = vmatpush3.bf16.msra.mxu1 %v547_v20 }
  0x1d   :  { %492 = vmatprep.subr.bf16.mxu1 %v548_v21 }
  0x20   :  { %493 = vmatpush3.bf16.msra.mxu1 %v549_v22 }
  0xca   :  { %v109_v32 = vpop.f32.mrf.mxu0 }
  0xcb   :  { %v110_v33 = vadd.f32 %v109_v32, %v44_v30 }
  0xcc   :  { %v111_v34 = vpop.f32.mrf.mxu0 }
  0xcd   :  { %v112_v35 = vadd.f32 %v111_v34, %v48_v31  ;;  %v116_v36 = vmax.f32 %v110_v33, 0.0 }
  0xce   :  { %v113_v37 = vpop.f32.mrf.mxu0 }
  0xcf   :  { %v117_v38 = vmax.f32 %v112_v35, 0.0  ;;  %v118_v41 = vpack.c.bf16 %v116_v36, %v116_v36 }
  0xd0   :  { %v114_v39 = vpop.f32.mrf.mxu0 }
  0xd1   :  { %v119_v40 = vpack.c.bf16 %v117_v38, %v117_v38 }
  0xd3   :  { %287 = vmatprep.mubr.bf16.mxu1 %v119_v40 }
  0xd4   :  { %288 = vmatmul.mubr.bf16.vlgmr.msra.gmra.mxu1 %v118_v41 }
 0x194   :  { %v494_v45 = vpop.f32.mrf.mxu1 }
 0x196   :  { %v495_v47 = vpop.f32.mrf.mxu1 }
 0x197   :  { %v496_v48 = vadd.f32 %v495_v47, %v494_v45 }
 0x198   :  { %v497_v49 = vpop.f32.mrf.mxu1 }
 0x199   :  { %v290_v50 = vadd.f32 %v496_v48, %v452_v46 }
 0x19a   :  { %v498_v51 = vpop.f32.mrf.mxu1 }
 0x19b   :  { %v295_v52 = vmax.f32 %v290_v50, 0.0 }
 0x19d   :  { %v296_v54 = vpack.c.bf16 %v295_v52, %v295_v52 }
 0x19f   :  { %516 = vmatmul.mubr.msk.bf16.vlgmr.msra.gmra.mxu0 %vm336_vm2, %v296_v54 }
 0x1a0   :  { %520 = vmatpush3.bf16.msra.mxu0 %v554_v53  ;;  %521 = vmatprep.mubr.msk.bf16.mxu0 %vm557_vm1, %v556_v23 }
 0x25f   :  { %v374_v56 = vpop.f32.mrf.mxu0 }
 0x260   :  { %v375_v57 = vadd.f32 %v469_v55, %v374_v56 }
 0x261   :  { %v517_v58 = vpop.f32.mrf.mxu0 }
 0x262   :  { %v380_v59 = vmax.f32 %v375_v57, 0.0 }
 0x263   :  { %v377_v60 = vpop.f32.mrf.mxu0 }
 0x264   :  { %v381_v61 = vpack.c.bf16 %v380_v59, %v380_v59 }
 0x265   :  { %v518_v62 = vpop.f32.mrf.mxu0 }
 0x266   :  { %522 = vmatmul.mubr.msk.bf16.vlgmr.msra.gmra.mxu0 %vm397_vm3, %v381_v61 }
 0x326   :  { %v435_v0 = vpop.f32.mrf.mxu0 }
 0x327   :  { %v436_v1 = vadd.f32 %v475_v63, %v435_v0 }
 0x328   :  { %v523_v2 = vpop.f32.mrf.mxu0 }
 0x329   :  { %442 = vst.msk [vmem:[%s712_s9] sm:$0xff] %vm441_vm4, %v436_v1 }
 0x32a   :  { %v438_v3 = vpop.f32.mrf.mxu0 }
 0x32c   :  { %v524_v4 = vpop.f32.mrf.mxu0 }

</bundles_post_ra>
